<compile_context>
chip_gen: v7x
topology: tpu7x:2x2x1
jax: 0.10.0
libtpu: 0.0.40
codegen_flags: <defaults>
</compile_context>

<pallas_src>
import functools

import jax
import jax.numpy as jnp
from jax.experimental import pallas as pl
from jax.experimental.pallas import tpu as pltpu


def _round_up(x, m):
    return (x + m - 1) // m * m


def _dropout_conv1x1_kernel(x_ref, m_ref, w_ref, b_ref, o_ref):
    # x_ref: (1, C, T)   m_ref: (1, 1, C)   w_ref: (K, C)   b_ref: (K, 1) f32
    # o_ref: (1, K, T)
    wm = w_ref[...] * m_ref[0]                                  # dropout folded into weight
    out = jnp.dot(wm, x_ref[0], preferred_element_type=jnp.float32)   # [K, T] on MXU
    o_ref[0] = (out + b_ref[...]).astype(o_ref.dtype)


def _dropout_conv1x1_batched_kernel(x_ref, m_ref, w_ref, b_ref, o_ref):
    # Small-HW path: whole problem in one grid step.
    # x_ref: (N, C, HW)  m_ref: (N, 1, C)  w_ref: (K, C)  b_ref: (K, 1) f32
    # o_ref: (N, K, HW)
    w = w_ref[...]
    b = b_ref[...]
    for i in range(x_ref.shape[0]):                             # N is tiny here; static unroll
        wm = w * m_ref[i]                                       # (K, C) * (1, C)
        out = jnp.dot(wm, x_ref[i], preferred_element_type=jnp.float32)
        o_ref[i] = (out + b).astype(o_ref.dtype)


@functools.partial(jax.jit, static_argnames=("drop_rate", "training"))
def dropout_decoder_forward(x_nchw, weight, bias, mask_key, drop_rate=0.1,
                            training=True):
    """x_nchw: [N, C, H, W].  weight: [K, C] (1x1 conv).  bias: [K]."""
    N, C, H, W = x_nchw.shape
    K = weight.shape[0]
    HW = H * W

    # ---- glue: free reshape, stays in NCHW layout (no transposes, no pad) ----
    x = x_nchw.reshape(N, C, HW)
    itemsize = jnp.dtype(x.dtype).itemsize

    # ---- spatial dropout channel mask (Dropout2d semantics), per (n, c) ------
    # Rescale computed in f32, cast once (avoids bf16 scale error on kept chans).
    if training and drop_rate > 0.0:
        keep = jax.random.bernoulli(mask_key, 1.0 - drop_rate, (N, 1, C))
        mask = (keep.astype(jnp.float32) / (1.0 - drop_rate)).astype(x.dtype)
    else:
        mask = jnp.ones((N, 1, C), dtype=x.dtype)

    w = weight.astype(x.dtype)                     # [K, C], native PyTorch layout
    b = bias.astype(jnp.float32).reshape(K, 1)     # [K, 1], added to f32 accumulator

    cost = pl.CostEstimate(
        flops=2 * N * HW * C * K,
        transcendentals=0,
        bytes_accessed=(N * C * HW + N * K * HW + K * C + N * C) * itemsize + K * 4,
    )

    # Tile cap: double-buffered x blocks stay <= ~8 MiB f32 / ~4 MiB bf16, inside
    # every generation's default scoped VMEM (v5e 16 MiB, v6e/v7x 32 MiB).
    tile_cap = 4096 if itemsize >= 4 else 8192
    vmem_limit = 32 << 20                          # <= physical VMEM on v5e/v6e/v7x

    # Small-HW regime: HW fits one tile and the whole activation is tiny -> fold
    # the batch into a single grid step so per-step overhead isn't paid N times.
    small_path = (HW <= tile_cap) and (N * C * HW * itemsize) <= (4 << 20)

    if small_path:
        out = pl.pallas_call(
            _dropout_conv1x1_batched_kernel,
            out_shape=jax.ShapeDtypeStruct((N, K, HW), x.dtype),
            grid_spec=pltpu.PrefetchScalarGridSpec(
                num_scalar_prefetch=0,
                grid=(1,),
                in_specs=[
                    pl.BlockSpec((N, C, HW), lambda t: (0, 0, 0)),
                    pl.BlockSpec((N, 1, C), lambda t: (0, 0, 0)),
                    pl.BlockSpec((K, C), lambda t: (0, 0)),
                    pl.BlockSpec((K, 1), lambda t: (0, 0)),
                ],
                out_specs=pl.BlockSpec((N, K, HW), lambda t: (0, 0, 0)),
            ),
            compiler_params=pltpu.CompilerParams(
                dimension_semantics=("arbitrary",),
                vmem_limit_bytes=vmem_limit),
            cost_estimate=cost,
        )(x, mask, w, b)
    else:
        tile = min(tile_cap, _round_up(HW, 128))   # lane-aligned; boundary block clipped
        num_tiles = pl.cdiv(HW, tile)
        # TODO(synk): on v7x an odd, small N*num_tiles leaves one TensorCore idle
        # for the last step; could nudge `tile` to even out the step count.
        out = pl.pallas_call(
            _dropout_conv1x1_kernel,
            out_shape=jax.ShapeDtypeStruct((N, K, HW), x.dtype),
            grid_spec=pltpu.PrefetchScalarGridSpec(
                num_scalar_prefetch=0,
                grid=(N, num_tiles),
                in_specs=[
                    pl.BlockSpec((1, C, tile), lambda n, t: (n, 0, t)),
                    pl.BlockSpec((1, 1, C), lambda n, t: (n, 0, 0)),
                    pl.BlockSpec((K, C), lambda n, t: (0, 0)),   # weight resident
                    pl.BlockSpec((K, 1), lambda n, t: (0, 0)),   # bias resident
                ],
                out_specs=pl.BlockSpec((1, K, tile), lambda n, t: (n, 0, t)),
            ),
            compiler_params=pltpu.CompilerParams(
                dimension_semantics=("parallel", "parallel"),
                vmem_limit_bytes=vmem_limit),
            cost_estimate=cost,
        )(x, mask, w, b)

    # ---- glue: free reshape back to NCHW image layout ----
    return out.reshape(N, K, H, W)


if __name__ == "__main__":
    key = jax.random.PRNGKey(0)
    k_x, k_w, k_b, k_mask = jax.random.split(key, 4)

    N, C, H, W = 2, 256, 16, 16   # conv requires 256 input channels
    num_classes = 8
    drop_rate = 0.1

    x = jax.random.normal(k_x, (N, C, H, W), dtype=jnp.float32)
    # Deterministic synthetic parameters (Conv2d(256, num_classes, kernel_size=1)).
    bound = 1.0 / (C ** 0.5)
    weight = jax.random.uniform(k_w, (num_classes, C), jnp.float32, -bound, bound)
    bias = jax.random.uniform(k_b, (num_classes,), jnp.float32, -bound, bound)

    out = dropout_decoder_forward(x, weight, bias, k_mask,
                                  drop_rate=drop_rate, training=True)
    out = jax.block_until_ready(out)

    # Sanity check against a plain-JAX reference using the identical mask.
    keep = jax.random.bernoulli(k_mask, 1.0 - drop_rate, (N, 1, C))
    mask_nc = keep.astype(jnp.float32)[:, 0, :] / (1.0 - drop_rate)     # [N, C]
    x_d = x * mask_nc[:, :, None, None]
    ref = jnp.einsum("nchw,kc->nkhw", x_d, weight) + bias.reshape(1, -1, 1, 1)
    assert out.shape == (N, num_classes, H, W)
    assert jnp.allclose(out, ref, atol=1e-4, rtol=1e-4)

    # Also exercise the tiled (large-HW, clipped boundary block) path once.
    H2, W2 = 72, 72                      # HW = 5184, not a multiple of 4096
    x2 = jax.random.normal(k_x, (N, C, H2, W2), dtype=jnp.float32)
    out2 = jax.block_until_ready(
        dropout_decoder_forward(x2, weight, bias, k_mask,
                                drop_rate=drop_rate, training=True))
    x2_d = x2 * mask_nc[:, :, None, None]
    ref2 = jnp.einsum("nchw,kc->nkhw", x2_d, weight) + bias.reshape(1, -1, 1, 1)
    assert out2.shape == (N, num_classes, H2, W2)
    assert jnp.allclose(out2, ref2, atol=1e-4, rtol=1e-4)

    print("KERNEL_OK")
</pallas_src>

<mosaic_0001>
module attributes {stable_mosaic.version = 11 : i64} {
  func.func @_dropout_conv1x1_batched_kernel(%arg0: i32, %arg1: memref<2x256x256xf32, #tpu.memory_space<vmem>>, %arg2: memref<2x1x256xf32, #tpu.memory_space<vmem>>, %arg3: memref<8x256xf32, #tpu.memory_space<vmem>>, %arg4: memref<8x1xf32, #tpu.memory_space<vmem>>, %arg5: memref<2x8x256xf32, #tpu.memory_space<vmem>>) attributes {dimension_semantics = [#tpu.dimension_semantics<arbitrary>], iteration_bounds = array<i64: 1>, scalar_prefetch = 0 : i64, scratch_operands = 0 : i64, tpu.core_type = #tpu.core_type<tc>, window_params = [{pipeline_mode = #tpu.pipeline_mode<synchronous>, transform_indices = @transform_0, window_bounds = array<i64: 2, 256, 256>}, {pipeline_mode = #tpu.pipeline_mode<synchronous>, transform_indices = @transform_1, window_bounds = array<i64: 2, 1, 256>}, {pipeline_mode = #tpu.pipeline_mode<synchronous>, transform_indices = @transform_2, window_bounds = array<i64: 8, 256>}, {pipeline_mode = #tpu.pipeline_mode<synchronous>, transform_indices = @transform_3, window_bounds = array<i64: 8, 1>}, {pipeline_mode = #tpu.pipeline_mode<synchronous>, transform_indices = @transform_4, window_bounds = array<i64: 2, 8, 256>}]} {
    %c0 = arith.constant 0 : index
    %c0_0 = arith.constant 0 : index
    %0 = vector.load %arg3[%c0, %c0_0] : memref<8x256xf32, #tpu.memory_space<vmem>>, vector<8x256xf32>
    %c0_1 = arith.constant 0 : index
    %c0_2 = arith.constant 0 : index
    %1 = vector.load %arg4[%c0_1, %c0_2] : memref<8x1xf32, #tpu.memory_space<vmem>>, vector<8x1xf32>
    %c0_3 = arith.constant 0 : index
    %c0_4 = arith.constant 0 : index
    %c0_5 = arith.constant 0 : index
    %2 = vector.load %arg2[%c0_3, %c0_4, %c0_5] : memref<2x1x256xf32, #tpu.memory_space<vmem>>, vector<1x1x256xf32>
    %3 = vector.shape_cast %2 : vector<1x1x256xf32> to vector<1x256xf32>
    %4 = vector.broadcast %3 : vector<1x256xf32> to vector<8x256xf32>
    %5 = arith.mulf %0, %4 : vector<8x256xf32>
    %c0_6 = arith.constant 0 : index
    %c0_7 = arith.constant 0 : index
    %c0_8 = arith.constant 0 : index
    %6 = vector.load %arg1[%c0_6, %c0_7, %c0_8] : memref<2x256x256xf32, #tpu.memory_space<vmem>>, vector<1x256x256xf32>
    %7 = vector.shape_cast %6 : vector<1x256x256xf32> to vector<256x256xf32>
    %cst = arith.constant dense<0.000000e+00> : vector<8x256xf32>
    %8 = tpu.matmul %5, %7, %cst {dimension_numbers = #tpu.dot_dimension_numbers<[1], [0], [0], [1], [0, 0, 1, 1], [], []>} : vector<8x256xf32>, vector<256x256xf32>, vector<8x256xf32> -> vector<8x256xf32>
    %9 = vector.broadcast %1 : vector<8x1xf32> to vector<8x256xf32>
    %10 = arith.addf %8, %9 : vector<8x256xf32>
    %c0_9 = arith.constant 0 : index
    %c0_10 = arith.constant 0 : index
    %c0_11 = arith.constant 0 : index
    %11 = vector.load %arg5[%c0_9, %c0_10, %c0_11] : memref<2x8x256xf32, #tpu.memory_space<vmem>>, vector<1x8x256xf32>
    %12 = vector.shape_cast %11 : vector<1x8x256xf32> to vector<8x256xf32>
    %13 = vector.shape_cast %10 : vector<8x256xf32> to vector<1x8x256xf32>
    tpu.vector_store %arg5[%c0_9, %c0_10, %c0_11], %13 {strides = array<i32>} : memref<2x8x256xf32, #tpu.memory_space<vmem>>, vector<1x8x256xf32>,
    %c1 = arith.constant 1 : index
    %c0_12 = arith.constant 0 : index
    %c0_13 = arith.constant 0 : index
    %14 = vector.load %arg2[%c1, %c0_12, %c0_13] : memref<2x1x256xf32, #tpu.memory_space<vmem>>, vector<1x1x256xf32>
    %15 = vector.shape_cast %14 : vector<1x1x256xf32> to vector<1x256xf32>
    %16 = vector.broadcast %15 : vector<1x256xf32> to vector<8x256xf32>
    %17 = arith.mulf %0, %16 : vector<8x256xf32>
    %c1_14 = arith.constant 1 : index
    %c0_15 = arith.constant 0 : index
    %c0_16 = arith.constant 0 : index
    %18 = vector.load %arg1[%c1_14, %c0_15, %c0_16] : memref<2x256x256xf32, #tpu.memory_space<vmem>>, vector<1x256x256xf32>
    %19 = vector.shape_cast %18 : vector<1x256x256xf32> to vector<256x256xf32>
    %cst_17 = arith.constant dense<0.000000e+00> : vector<8x256xf32>
    %20 = tpu.matmul %17, %19, %cst_17 {dimension_numbers = #tpu.dot_dimension_numbers<[1], [0], [0], [1], [0, 0, 1, 1], [], []>} : vector<8x256xf32>, vector<256x256xf32>, vector<8x256xf32> -> vector<8x256xf32>
    %21 = vector.broadcast %1 : vector<8x1xf32> to vector<8x256xf32>
    %22 = arith.addf %20, %21 : vector<8x256xf32>
    %c1_18 = arith.constant 1 : index
    %c0_19 = arith.constant 0 : index
    %c0_20 = arith.constant 0 : index
    %23 = vector.load %arg5[%c1_18, %c0_19, %c0_20] : memref<2x8x256xf32, #tpu.memory_space<vmem>>, vector<1x8x256xf32>
    %24 = vector.shape_cast %23 : vector<1x8x256xf32> to vector<8x256xf32>
    %25 = vector.shape_cast %22 : vector<8x256xf32> to vector<1x8x256xf32>
    tpu.vector_store %arg5[%c1_18, %c0_19, %c0_20], %25 {strides = array<i32>} : memref<2x8x256xf32, #tpu.memory_space<vmem>>, vector<1x8x256xf32>,
    return
  }
  func.func @transform_0(%arg0: i32) -> (i32, i32, i32) {
    %c0_i32 = arith.constant 0 : i32
    %c0_i32_0 = arith.constant 0 : i32
    %c0_i32_1 = arith.constant 0 : i32
    %c0_i32_2 = arith.constant 0 : i32
    return %c0_i32, %c0_i32_0, %c0_i32_1 : i32, i32, i32
  }
  func.func @transform_1(%arg0: i32) -> (i32, i32, i32) {
    %c0_i32 = arith.constant 0 : i32
    %c0_i32_0 = arith.constant 0 : i32
    %c0_i32_1 = arith.constant 0 : i32
    %c0_i32_2 = arith.constant 0 : i32
    return %c0_i32, %c0_i32_0, %c0_i32_1 : i32, i32, i32
  }
  func.func @transform_2(%arg0: i32) -> (i32, i32) {
    %c0_i32 = arith.constant 0 : i32
    %c0_i32_0 = arith.constant 0 : i32
    %c0_i32_1 = arith.constant 0 : i32
    return %c0_i32, %c0_i32_0 : i32, i32
  }
  func.func @transform_3(%arg0: i32) -> (i32, i32) {
    %c0_i32 = arith.constant 0 : i32
    %c0_i32_0 = arith.constant 0 : i32
    %c0_i32_1 = arith.constant 0 : i32
    return %c0_i32, %c0_i32_0 : i32, i32
  }
  func.func @transform_4(%arg0: i32) -> (i32, i32, i32) {
    %c0_i32 = arith.constant 0 : i32
    %c0_i32_0 = arith.constant 0 : i32
    %c0_i32_1 = arith.constant 0 : i32
    %c0_i32_2 = arith.constant 0 : i32
    return %c0_i32, %c0_i32_0, %c0_i32_1 : i32, i32, i32
  }
}

</mosaic_0001>

<bundles_post_ra>
// kernel: dropout_decoder_forward.1
= control target key start
LH: loop header
LB: loop body
LE: loop exit
PB: predicated region body
PF: predicated region fallthrough
CT: control target
= control target key end

     0   :  { %v531_v3 = vmov 0   ;;  %s980_s0 = inlined_call_operand.vmem [shape: f32[2,256,256], index: 0, kind: input, shape index: {}]   ;;  %s981_s1 = inlined_call_operand.vmem [shape: f32[2,1,256], index: 1, kind: input, shape index: {}]   ;;  %s982_s2 = inlined_call_operand.vmem [shape: f32[8,256], index: 2, kind: input, shape index: {}]   ;;  %s983_s3 = inlined_call_operand.vmem [shape: f32[8,1], index: 3, kind: input, shape index: {}]   ;;  %s984_s4 = inlined_call_operand.vmem [shape: f32[2,8,256], index: 4, kind: output, shape index: {}]  }
   0x1   :  { %v35_v0 = vld [vmem:[%s980_s0 + $0x8] sm:$0xff]  ;;  %v37_v1 = vld [vmem:[%s980_s0 + $0x18] sm:$0xff]  ;;  %530 = vset.pattern.permute.xlu0 %v531_v3  ;;  %v34_v6 = vld [vmem:[%s980_s0] sm:$0xff] }
   0x2   :  { %v336_v2 = vld [vmem:[%s980_s0 + $0x208] sm:$0xff]  ;;  %v401_v4 = vpack.c.bf16 %v37_v1, %v35_v0  ;;  %v338_v5 = vld [vmem:[%s980_s0 + $0x218] sm:$0xff]  ;;  %v36_v7 = vld [vmem:[%s980_s0 + $0x10] sm:$0xff] }
   0x3   :  { %v465_v8 = vpack.c.bf16 %v338_v5, %v336_v2  ;;  %v403_v9 = vpack.c.bf16 %v36_v7, %v34_v6  ;;  %v335_v10 = vld [vmem:[%s980_s0 + $0x200] sm:$0xff]  ;;  %v337_v11 = vld [vmem:[%s980_s0 + $0x210] sm:$0xff]  ;;  %v39_v12 = vld [vmem:[%s980_s0 + $0x28] sm:$0xff] }
   0x4   :  { %402 = vmatprep.subr.bf16.mxu0 %v401_v4  ;;  %v467_v13 = vpack.c.bf16 %v337_v11, %v335_v10  ;;  %v41_v14 = vld [vmem:[%s980_s0 + $0x38] sm:$0xff]  ;;  %v340_v15 = vld [vmem:[%s980_s0 + $0x228] sm:$0xff]  ;;  %v38_v19 = vld [vmem:[%s980_s0 + $0x20] sm:$0xff] }
   0x5   :  { %v342_v16 = vld [vmem:[%s980_s0 + $0x238] sm:$0xff]  ;;  %466 = vmatprep.subr.bf16.mxu1 %v465_v8  ;;  %404 = vmatpush1.bf16.msra.mxu0 %v403_v9  ;;  %v405_v17 = vpack.c.bf16 %v41_v14, %v39_v12  ;;  %v40_v20 = vld [vmem:[%s980_s0 + $0x30] sm:$0xff]  ;;  %v339_v21 = vld [vmem:[%s980_s0 + $0x220] sm:$0xff] }
   0x6   :  { %v469_v18 = vpack.c.bf16 %v342_v16, %v340_v15  ;;  %468 = vmatpush1.bf16.msra.mxu1 %v467_v13  ;;  %v407_v22 = vpack.c.bf16 %v40_v20, %v38_v19  ;;  %v341_v23 = vld [vmem:[%s980_s0 + $0x230] sm:$0xff]  ;;  %v43_v24 = vld [vmem:[%s980_s0 + $0x48] sm:$0xff]  ;;  %v45_v25 = vld [vmem:[%s980_s0 + $0x58] sm:$0xff] }
   0x7   :  { %406 = vmatprep.subr.bf16.mxu0 %v405_v17  ;;  %v471_v26 = vpack.c.bf16 %v341_v23, %v339_v21  ;;  %v409_v27 = vpack.c.bf16 %v45_v25, %v43_v24  ;;  %v344_v28 = vld [vmem:[%s980_s0 + $0x248] sm:$0xff]  ;;  %v346_v29 = vld [vmem:[%s980_s0 + $0x258] sm:$0xff]  ;;  %v42_v30 = vld [vmem:[%s980_s0 + $0x40] sm:$0xff] }
   0x8   :  { %470 = vmatprep.subr.bf16.mxu1 %v469_v18  ;;  %v473_v31 = vpack.c.bf16 %v346_v29, %v344_v28  ;;  %v44_v32 = vld [vmem:[%s980_s0 + $0x50] sm:$0xff]  ;;  %v343_v33 = vld [vmem:[%s980_s0 + $0x240] sm:$0xff]  ;;  %v47_v36 = vld [vmem:[%s980_s0 + $0x68] sm:$0xff] }
   0x9   :  { %v345_v34 = vld [vmem:[%s980_s0 + $0x250] sm:$0xff]  ;;  %408 = vmatpush1.bf16.msra.mxu0 %v407_v22  ;;  %v411_v35 = vpack.c.bf16 %v44_v32, %v42_v30  ;;  %v49_v37 = vld [vmem:[%s980_s0 + $0x78] sm:$0xff]  ;;  %v348_v38 = vld [vmem:[%s980_s0 + $0x268] sm:$0xff] }
   0xa   :  { %472 = vmatpush1.bf16.msra.mxu1 %v471_v26  ;;  %410 = vmatprep.subr.bf16.mxu0 %v409_v27  ;;  %v475_v39 = vpack.c.bf16 %v345_v34, %v343_v33  ;;  %v413_v40 = vpack.c.bf16 %v49_v37, %v47_v36  ;;  %v350_v41 = vld [vmem:[%s980_s0 + $0x278] sm:$0xff]  ;;  %v46_v42 = vld [vmem:[%s980_s0 + $0x60] sm:$0xff]  ;;  %v48_v43 = vld [vmem:[%s980_s0 + $0x70] sm:$0xff] }
   0xb   :  { %474 = vmatprep.subr.bf16.mxu1 %v473_v31  ;;  %v477_v44 = vpack.c.bf16 %v350_v41, %v348_v38  ;;  %v347_v45 = vld [vmem:[%s980_s0 + $0x260] sm:$0xff]  ;;  %v349_v46 = vld [vmem:[%s980_s0 + $0x270] sm:$0xff]  ;;  %v51_v47 = vld [vmem:[%s980_s0 + $0x88] sm:$0xff]  ;;  %v415_v51 = vpack.c.bf16 %v48_v43, %v46_v42 }
   0xc   :  { %v53_v48 = vld [vmem:[%s980_s0 + $0x98] sm:$0xff]  ;;  %v352_v49 = vld [vmem:[%s980_s0 + $0x288] sm:$0xff]  ;;  %v479_v52 = vpack.c.bf16 %v349_v46, %v347_v45  ;;  %v50_v54 = vld [vmem:[%s980_s0 + $0x80] sm:$0xff] }
   0xd   :  { %v354_v50 = vld [vmem:[%s980_s0 + $0x298] sm:$0xff]  ;;  %412 = vmatpush1.bf16.msra.mxu0 %v411_v35  ;;  %v417_v53 = vpack.c.bf16 %v53_v48, %v51_v47  ;;  %v52_v55 = vld [vmem:[%s980_s0 + $0x90] sm:$0xff]  ;;  %v351_v56 = vld [vmem:[%s980_s0 + $0x280] sm:$0xff]  ;;  %v22_v48 = vlaneseq }
   0xe   :  { %476 = vmatpush1.bf16.msra.mxu1 %v475_v39  ;;  %414 = vmatprep.subr.bf16.mxu0 %v413_v40  ;;  %v481_v57 = vpack.c.bf16 %v354_v50, %v352_v49  ;;  %v353_v58 = vld [vmem:[%s980_s0 + $0x290] sm:$0xff]  ;;  %v55_v59 = vld [vmem:[%s980_s0 + $0xa8] sm:$0xff]  ;;  %v57_v60 = vld [vmem:[%s980_s0 + $0xb8] sm:$0xff]  ;;  %v419_v63 = vpack.c.bf16 %v52_v55, %v50_v54 }
   0xf   :  { %478 = vmatprep.subr.bf16.mxu1 %v477_v44  ;;  %v356_v61 = vld [vmem:[%s980_s0 + $0x2a8] sm:$0xff]  ;;  %v358_v62 = vld [vmem:[%s980_s0 + $0x2b8] sm:$0xff]  ;;  %v483_v0 = vpack.c.bf16 %v353_v58, %v351_v56  ;;  %v421_v1 = vpack.c.bf16 %v57_v60, %v55_v59  ;;  %v54_v2 = vld [vmem:[%s980_s0 + $0xa0] sm:$0xff] }
  0x10   :  { %v56_v3 = vld [vmem:[%s980_s0 + $0xb0] sm:$0xff]  ;;  %v355_v4 = vld [vmem:[%s980_s0 + $0x2a0] sm:$0xff]  ;;  %v485_v5 = vpack.c.bf16 %v358_v62, %v356_v61  ;;  %v59_v7 = vld [vmem:[%s980_s0 + $0xc8] sm:$0xff]  ;;  %v809_v61 = vshrl.u32 %v22_v48, 7 }
  0x11   :  { %416 = vmatpush1.bf16.msra.mxu0 %v415_v51  ;;  %v357_v6 = vld [vmem:[%s980_s0 + $0x2b0] sm:$0xff]  ;;  %v61_v8 = vld [vmem:[%s980_s0 + $0xd8] sm:$0xff]  ;;  %v360_v9 = vld [vmem:[%s980_s0 + $0x2c8] sm:$0xff]  ;;  %v423_v11 = vpack.c.bf16 %v56_v3, %v54_v2 }
  0x12   :  { %480 = vmatpush1.bf16.msra.mxu1 %v479_v52  ;;  %418 = vmatprep.subr.bf16.mxu0 %v417_v53  ;;  %v362_v10 = vld [vmem:[%s980_s0 + $0x2d8] sm:$0xff]  ;;  %v487_v12 = vpack.c.bf16 %v357_v6, %v355_v4  ;;  %v425_v13 = vpack.c.bf16 %v61_v8, %v59_v7  ;;  %v58_v14 = vld [vmem:[%s980_s0 + $0xc0] sm:$0xff]  ;;  %v60_v15 = vld [vmem:[%s980_s0 + $0xd0] sm:$0xff] }
  0x13   :  { %482 = vmatprep.subr.bf16.mxu1 %v481_v57  ;;  %v359_v16 = vld [vmem:[%s980_s0 + $0x2c0] sm:$0xff]  ;;  %v489_v17 = vpack.c.bf16 %v362_v10, %v360_v9  ;;  %v361_v18 = vld [vmem:[%s980_s0 + $0x2d0] sm:$0xff]  ;;  %v63_v19 = vld [vmem:[%s980_s0 + $0xe8] sm:$0xff]  ;;  %v427_v23 = vpack.c.bf16 %v60_v15, %v58_v14 }
  0x14   :  { %v65_v20 = vld [vmem:[%s980_s0 + $0xf8] sm:$0xff]  ;;  %v364_v21 = vld [vmem:[%s980_s0 + $0x2e8] sm:$0xff]  ;;  %v491_v24 = vpack.c.bf16 %v361_v18, %v359_v16  ;;  %v62_v26 = vld [vmem:[%s980_s0 + $0xe0] sm:$0xff] }
  0x15   :  { %420 = vmatpush1.bf16.msra.mxu0 %v419_v63  ;;  %v366_v22 = vld [vmem:[%s980_s0 + $0x2f8] sm:$0xff]  ;;  %v429_v25 = vpack.c.bf16 %v65_v20, %v63_v19  ;;  %v64_v27 = vld [vmem:[%s980_s0 + $0xf0] sm:$0xff]  ;;  %v363_v28 = vld [vmem:[%s980_s0 + $0x2e0] sm:$0xff] }
  0x16   :  { %484 = vmatpush1.bf16.msra.mxu1 %v483_v0  ;;  %422 = vmatprep.subr.bf16.mxu0 %v421_v1  ;;  %v493_v29 = vpack.c.bf16 %v366_v22, %v364_v21  ;;  %v365_v30 = vld [vmem:[%s980_s0 + $0x2f0] sm:$0xff]  ;;  %v67_v31 = vld [vmem:[%s980_s0 + $0x108] sm:$0xff]  ;;  %v69_v32 = vld [vmem:[%s980_s0 + $0x118] sm:$0xff]  ;;  %v431_v35 = vpack.c.bf16 %v64_v27, %v62_v26 }
  0x17   :  { %486 = vmatprep.subr.bf16.mxu1 %v485_v5  ;;  %v368_v33 = vld [vmem:[%s980_s0 + $0x308] sm:$0xff]  ;;  %v370_v34 = vld [vmem:[%s980_s0 + $0x318] sm:$0xff]  ;;  %v495_v36 = vpack.c.bf16 %v365_v30, %v363_v28  ;;  %v433_v37 = vpack.c.bf16 %v69_v32, %v67_v31  ;;  %v66_v38 = vld [vmem:[%s980_s0 + $0x100] sm:$0xff] }
  0x18   :  { %v68_v39 = vld [vmem:[%s980_s0 + $0x110] sm:$0xff]  ;;  %v367_v40 = vld [vmem:[%s980_s0 + $0x300] sm:$0xff]  ;;  %v497_v41 = vpack.c.bf16 %v370_v34, %v368_v33  ;;  %v71_v43 = vld [vmem:[%s980_s0 + $0x128] sm:$0xff] }
  0x19   :  { %424 = vmatpush1.bf16.msra.mxu0 %v423_v11  ;;  %v369_v42 = vld [vmem:[%s980_s0 + $0x310] sm:$0xff]  ;;  %v73_v44 = vld [vmem:[%s980_s0 + $0x138] sm:$0xff]  ;;  %v372_v45 = vld [vmem:[%s980_s0 + $0x328] sm:$0xff]  ;;  %v435_v47 = vpack.c.bf16 %v68_v39, %v66_v38 }
  0x1a   :  { %488 = vmatpush1.bf16.msra.mxu1 %v487_v12  ;;  %426 = vmatprep.subr.bf16.mxu0 %v425_v13  ;;  %v374_v46 = vld [vmem:[%s980_s0 + $0x338] sm:$0xff]  ;;  %v499_v49 = vpack.c.bf16 %v369_v42, %v367_v40  ;;  %v437_v50 = vpack.c.bf16 %v73_v44, %v71_v43  ;;  %v70_v51 = vld [vmem:[%s980_s0 + $0x120] sm:$0xff]  ;;  %v72_v52 = vld [vmem:[%s980_s0 + $0x130] sm:$0xff]  ;;  %v28_v12 = vsub.s32 1, %v809_v61 }
  0x1b   :  { %490 = vmatprep.subr.bf16.mxu1 %v489_v17  ;;  %v371_v53 = vld [vmem:[%s980_s0 + $0x320] sm:$0xff]  ;;  %v501_v54 = vpack.c.bf16 %v374_v46, %v372_v45  ;;  %v373_v55 = vld [vmem:[%s980_s0 + $0x330] sm:$0xff]  ;;  %v75_v56 = vld [vmem:[%s980_s0 + $0x148] sm:$0xff]  ;;  %v439_v60 = vpack.c.bf16 %v72_v52, %v70_v51 }
  0x1c   :  { %v77_v57 = vld [vmem:[%s980_s0 + $0x158] sm:$0xff]  ;;  %v376_v58 = vld [vmem:[%s980_s0 + $0x348] sm:$0xff]  ;;  %v503_v62 = vpack.c.bf16 %v373_v55, %v371_v53  ;;  %v74_v0 = vld [vmem:[%s980_s0 + $0x140] sm:$0xff] }
  0x1d   :  { %428 = vmatpush1.bf16.msra.mxu0 %v427_v23  ;;  %v378_v59 = vld [vmem:[%s980_s0 + $0x358] sm:$0xff]  ;;  %v441_v63 = vpack.c.bf16 %v77_v57, %v75_v56  ;;  %v76_v1 = vld [vmem:[%s980_s0 + $0x150] sm:$0xff]  ;;  %v375_v2 = vld [vmem:[%s980_s0 + $0x340] sm:$0xff] }
  0x1e   :  { %492 = vmatpush1.bf16.msra.mxu1 %v491_v24  ;;  %430 = vmatprep.subr.bf16.mxu0 %v429_v25  ;;  %v505_v3 = vpack.c.bf16 %v378_v59, %v376_v58  ;;  %v377_v4 = vld [vmem:[%s980_s0 + $0x350] sm:$0xff]  ;;  %v79_v5 = vld [vmem:[%s980_s0 + $0x168] sm:$0xff]  ;;  %v81_v6 = vld [vmem:[%s980_s0 + $0x178] sm:$0xff]  ;;  %v443_v9 = vpack.c.bf16 %v76_v1, %v74_v0 }
  0x1f   :  { %494 = vmatprep.subr.bf16.mxu1 %v493_v29  ;;  %v380_v7 = vld [vmem:[%s980_s0 + $0x368] sm:$0xff]  ;;  %v382_v8 = vld [vmem:[%s980_s0 + $0x378] sm:$0xff]  ;;  %v78_v10 = vld [vmem:[%s980_s0 + $0x160] sm:$0xff]  ;;  %v507_v13 = vpack.c.bf16 %v377_v4, %v375_v2  ;;  %v445_v14 = vpack.c.bf16 %v81_v6, %v79_v5 }
  0x20   :  { %v80_v11 = vld [vmem:[%s980_s0 + $0x170] sm:$0xff]  ;;  %v379_v15 = vld [vmem:[%s980_s0 + $0x360] sm:$0xff]  ;;  %v83_v17 = vld [vmem:[%s980_s0 + $0x188] sm:$0xff]  ;;  %v509_v18 = vpack.c.bf16 %v382_v8, %v380_v7 }
  0x21   :  { %432 = vmatpush1.bf16.msra.mxu0 %v431_v35  ;;  %v381_v16 = vld [vmem:[%s980_s0 + $0x370] sm:$0xff]  ;;  %v85_v19 = vld [vmem:[%s980_s0 + $0x198] sm:$0xff]  ;;  %v384_v20 = vld [vmem:[%s980_s0 + $0x388] sm:$0xff]  ;;  %v447_v25 = vpack.c.bf16 %v80_v11, %v78_v10 }
  0x22   :  { %496 = vmatpush1.bf16.msra.mxu1 %v495_v36  ;;  %434 = vmatprep.subr.bf16.mxu0 %v433_v37  ;;  %v386_v21 = vld [vmem:[%s980_s0 + $0x398] sm:$0xff]  ;;  %v18_v22 = vld [vmem:[%s982_s2 + $0x8] sm:$0xff]  ;;  %v866_v23 = vld [vmem:[%s981_s1] sm:$0x3]  ;;  %v511_v29 = vpack.c.bf16 %v381_v16, %v379_v15  ;;  %v449_v30 = vpack.c.bf16 %v85_v19, %v83_v17 }
  0x23   :  { %498 = vmatprep.subr.bf16.mxu1 %v497_v41  ;;  %v871_v24 = vld [vmem:[%s981_s1 + $0x2] sm:$0x3]  ;;  %v29_v26 = vrot.slane %v866_v23, %v28_v12  ;;  %v84_v32 = vld [vmem:[%s980_s0 + $0x190] sm:$0xff]  ;;  %v513_v34 = vpack.c.bf16 %v386_v21, %v384_v20  ;;  %v87_v36 = vld [vmem:[%s980_s0 + $0x1a8] sm:$0xff] }
  0x24   :  { %v186_v27 = vrot.slane %v871_v24, %v28_v12  ;;  %v19_v28 = vld [vmem:[%s983_s3] sm:$0xff]  ;;  %v385_v35 = vld [vmem:[%s980_s0 + $0x390] sm:$0xff]  ;;  %v89_v37 = vld [vmem:[%s980_s0 + $0x1b8] sm:$0xff] }
  0x25   :  { %436 = vmatpush1.bf16.msra.mxu0 %v435_v47  ;;  %v82_v31 = vld [vmem:[%s980_s0 + $0x180] sm:$0xff]  ;;  %v33_v38 = vmul.f32 %v29_v26, %v18_v22  ;;  %v388_v40 = vld [vmem:[%s980_s0 + $0x3a8] sm:$0xff]  ;;  %v390_v41 = vld [vmem:[%s980_s0 + $0x3b8] sm:$0xff]  ;;  %100 = vperm.xlu0 %530, %v19_v28   ;;  %v453_v44 = vpack.c.bf16 %v89_v37, %v87_v36 }
  0x26   :  { %500 = vmatpush1.bf16.msra.mxu1 %v499_v49  ;;  %438 = vmatprep.subr.bf16.mxu0 %v437_v50  ;;  %v383_v33 = vld [vmem:[%s980_s0 + $0x380] sm:$0xff]  ;;  %v190_v39 = vmul.f32 %v186_v27, %v18_v22  ;;  %v451_v42 = vpack.c.bf16 %v84_v32, %v82_v31  ;;  %v88_v46 = vld [vmem:[%s980_s0 + $0x1b0] sm:$0xff]  ;;  %v517_v48 = vpack.c.bf16 %v390_v41, %v388_v40  ;;  %v91_v50 = vld [vmem:[%s980_s0 + $0x1c8] sm:$0xff] }
  0x27   :  { %502 = vmatprep.subr.bf16.mxu1 %v501_v54  ;;  %167 = vmatprep.mubr.f32.mxu0 %v33_v38  ;;  %v515_v43 = vpack.c.bf16 %v385_v35, %v383_v33  ;;  %v86_v45 = vld [vmem:[%s980_s0 + $0x1a0] sm:$0xff]  ;;  %v389_v49 = vld [vmem:[%s980_s0 + $0x3b0] sm:$0xff]  ;;  %v93_v51 = vld [vmem:[%s980_s0 + $0x1d8] sm:$0xff] }
  0x28   :  { %v387_v47 = vld [vmem:[%s980_s0 + $0x3a0] sm:$0xff]  ;;  %320 = vmatprep.mubr.f32.mxu1 %v190_v39  ;;  %v392_v52 = vld [vmem:[%s980_s0 + $0x3c8] sm:$0xff]  ;;  %v394_v53 = vld [vmem:[%s980_s0 + $0x3d8] sm:$0xff]  ;;  %v455_v54 = vpack.c.bf16 %v88_v46, %v86_v45  ;;  %v457_v56 = vpack.c.bf16 %v93_v51, %v91_v50 }
  0x29   :  { %440 = vmatpush1.bf16.msra.mxu0 %v439_v60  ;;  %v519_v55 = vpack.c.bf16 %v389_v49, %v387_v47  ;;  %v90_v57 = vld [vmem:[%s980_s0 + $0x1c0] sm:$0xff]  ;;  %v92_v58 = vld [vmem:[%s980_s0 + $0x1d0] sm:$0xff]  ;;  %v521_v60 = vpack.c.bf16 %v394_v53, %v392_v52  ;;  %v97_v0 = vld [vmem:[%s980_s0 + $0x1f8] sm:$0xff] }
  0x2a   :  { %504 = vmatpush1.bf16.msra.mxu1 %v503_v62  ;;  %442 = vmatprep.subr.bf16.mxu0 %v441_v63  ;;  %v391_v59 = vld [vmem:[%s980_s0 + $0x3c0] sm:$0xff]  ;;  %v393_v62 = vld [vmem:[%s980_s0 + $0x3d0] sm:$0xff]  ;;  %v95_v63 = vld [vmem:[%s980_s0 + $0x1e8] sm:$0xff]  ;;  %v459_v4 = vpack.c.bf16 %v92_v58, %v90_v57 }
  0x2b   :  { %506 = vmatprep.subr.bf16.mxu1 %v505_v3  ;;  %v396_v1 = vld [vmem:[%s980_s0 + $0x3e8] sm:$0xff]  ;;  %v398_v2 = vld [vmem:[%s980_s0 + $0x3f8] sm:$0xff]  ;;  %v24_v3 = vsub.s32 0, %v809_v61  ;;  %v523_v5 = vpack.c.bf16 %v393_v62, %v391_v59  ;;  %v461_v6 = vpack.c.bf16 %v97_v0, %v95_v63  ;;  %v94_v7 = vld [vmem:[%s980_s0 + $0x1e0] sm:$0xff] }
  0x2c   :  { %v96_v8 = vld [vmem:[%s980_s0 + $0x1f0] sm:$0xff]  ;;  %v395_v61 = vld [vmem:[%s980_s0 + $0x3e0] sm:$0xff] }
  0x2d   :  { %444 = vmatpush1.bf16.msra.mxu0 %v443_v9  ;;  %v525_v9 = vpack.c.bf16 %v398_v2, %v396_v1  ;;  %v397_v10 = vld [vmem:[%s980_s0 + $0x3f0] sm:$0xff]  ;;  %v25_v11 = vrot.slane %v866_v23, %v24_v3  ;;  %v463_v12 = vpack.c.bf16 %v96_v8, %v94_v7 }
  0x2e   :  { %508 = vmatpush1.bf16.msra.mxu1 %v507_v13  ;;  %446 = vmatprep.subr.bf16.mxu0 %v445_v14  ;;  %v17_v13 = vld [vmem:[%s982_s2] sm:$0xff]  ;;  %v182_v14 = vrot.slane %v871_v24, %v24_v3  ;;  %v527_v15 = vpack.c.bf16 %v397_v10, %v395_v61 }
  0x2f   :  { %510 = vmatprep.subr.bf16.mxu1 %v509_v18  ;;  %v32_v16 = vmul.f32 %v25_v11, %v17_v13 }
  0x30   :  { %v189_v17 = vmul.f32 %v182_v14, %v17_v13 }
  0x31   :  { %448 = vmatpush1.bf16.msra.mxu0 %v447_v25 }
  0x32   :  { %512 = vmatpush1.bf16.msra.mxu1 %v511_v29  ;;  %450 = vmatprep.subr.bf16.mxu0 %v449_v30 }
  0x33   :  { %514 = vmatprep.subr.bf16.mxu1 %v513_v34 }
  0x35   :  { %452 = vmatpush1.bf16.msra.mxu0 %v451_v42 }
  0x36   :  { %516 = vmatpush1.bf16.msra.mxu1 %v515_v43  ;;  %454 = vmatprep.subr.bf16.mxu0 %v453_v44 }
  0x37   :  { %518 = vmatprep.subr.bf16.mxu1 %v517_v48 }
  0x39   :  { %456 = vmatpush1.bf16.msra.mxu0 %v455_v54 }
  0x3a   :  { %520 = vmatpush1.bf16.msra.mxu1 %v519_v55  ;;  %458 = vmatprep.subr.bf16.mxu0 %v457_v56 }
  0x3b   :  { %522 = vmatprep.subr.bf16.mxu1 %v521_v60 }
  0x3d   :  { %460 = vmatpush1.bf16.msra.mxu0 %v459_v4 }
  0x3e   :  { %524 = vmatpush1.bf16.msra.mxu1 %v523_v5  ;;  %462 = vmatprep.subr.bf16.mxu0 %v461_v6 }
  0x3f   :  { %526 = vmatprep.subr.bf16.mxu1 %v525_v9 }
  0x41   :  { %464 = vmatpush1.bf16.msra.mxu0 %v463_v12 }
  0x42   :  { %528 = vmatpush1.bf16.msra.mxu1 %v527_v15 }
  0x44   :  { %168 = vmatmul.mubr.f32.vlgmr.msra.gmra.mrb[0].mxu0 %v32_v16 }
  0x45   :  { %321 = vmatmul.mubr.f32.vlgmr.msra.gmra.mrb[0].mxu1 %v189_v17 }
  0xa4   :  { %v101_v18 = vpop.permute.xlu0 %100 }
 0x117   :  { %v169_v19 = vpop.f32.mrb[0].mxu0 }
 0x118   :  { %v170_v20 = vadd.f32 %v169_v19, %v101_v18  ;;  %v322_v21 = vpop.f32.mrb[0].mxu1  ;;  %v171_v22 = vpop.f32.mrb[1].mxu0 }
 0x119   :  { %v323_v23 = vadd.f32 %v322_v21, %v101_v18  ;;  %v172_v25 = vadd.f32 %v171_v22, %v101_v18  ;;  %v324_v26 = vpop.f32.mrb[1].mxu1 }
 0x11a   :  { %174 = vst [vmem:[%s984_s4] sm:$0xff] %v170_v20  ;;  %v325_v24 = vadd.f32 %v324_v26, %v101_v18 }
 0x11b   :  { %399 = vst [vmem:[%s984_s4 + $0x10] sm:$0xff] %v323_v23  ;;  %175 = vst [vmem:[%s984_s4 + $0x8] sm:$0xff] %v172_v25 }
 0x11c   :  { %400 = vst [vmem:[%s984_s4 + $0x18] sm:$0xff] %v325_v24 }

</bundles_post_ra>
